<compile_context>
chip_gen: v7x
topology: tpu7x:2x2x1
jax: 0.10.0
libtpu: 0.0.40
codegen_flags: <defaults>
</compile_context>

<pallas_src>
import functools

import jax
import jax.numpy as jnp
from jax.experimental import pallas as pl
from jax.experimental.pallas import tpu as pltpu

_LANES = 128
_MAX_BLOCK_ROWS = 2048        # 2048*128*4B = 1 MiB per input per pipeline buffer
_NUM_PARTS = 2                # v7x has 2 TensorCores; harmless (2 passes) elsewhere
_EPS = 2.0 ** (-23)


def _soft_dice_partial_kernel(pred_ref, target_ref, out_ref, acc_ref, *,
                              n_valid, chunks_per_part, block_rows):
    """Each part (outer grid axis) accumulates its partial loss sums.

    acc_ref: (block_rows, 128) f32 vector accumulator, reduced to a single
    lane-dense row (1, 1, 128) only in the finalize branch.
    """
    c = pl.program_id(0)
    i = pl.program_id(1)

    @pl.when(i == 0)
    def _init():
        acc_ref[...] = jnp.zeros_like(acc_ref)

    p = jax.nn.sigmoid(pred_ref[...].astype(jnp.float32))
    t = target_ref[...].astype(jnp.float32)
    # Exact f32 divide (pl.reciprocal(approx=True) would be ~free on the EUP but
    # costs ~1e-3 relative error; kept exact to hold the 1e-5 reference tolerance).
    loss = 1.0 - 2.0 * p * t / (p * p + t * t + jnp.float32(_EPS))

    # Mask out elements past the logical end of the flattened tensor (covers both
    # the partial tail block and fully-out-of-range clamped blocks).
    # NOTE: int32 flat indexing is fine for tensors up to ~2^31 elements.
    logical_block = c * chunks_per_part + i
    base = logical_block * (block_rows * _LANES)
    row_ids = jax.lax.broadcasted_iota(jnp.int32, (block_rows, _LANES), 0)
    lane_ids = jax.lax.broadcasted_iota(jnp.int32, (block_rows, _LANES), 1)
    flat_idx = base + row_ids * _LANES + lane_ids
    valid = flat_idx < n_valid

    acc_ref[...] += jnp.where(valid, loss, 0.0)

    @pl.when(i == chunks_per_part - 1)
    def _finalize():
        out_ref[...] = jnp.sum(acc_ref[...], axis=0).reshape(1, 1, _LANES)


@functools.partial(jax.jit, static_argnames=("reduction",))
def soft_dice_loss(pred, target, reduction="mean"):
    assert pred.shape == target.shape
    n_valid = int(pred.size)

    # Flatten row-major (same ordering as torch .view); keep native dtype (the
    # in-kernel cast avoids an extra f32 HBM copy for bf16/int inputs).
    pred_flat = jnp.ravel(pred)
    target_flat = jnp.ravel(target)

    rem = n_valid % _LANES
    if rem:
        # TODO(synk): sizes not divisible by 128 still fall back to a padded copy
        # to form the (rows, 128) slab; multiples of 128 take the copy-free path.
        pad = _LANES - rem
        pred_flat = jnp.pad(pred_flat, (0, pad))
        target_flat = jnp.pad(target_flat, (0, pad))

    rows = pred_flat.size // _LANES
    pred2d = pred_flat.reshape(rows, _LANES)
    target2d = target_flat.reshape(rows, _LANES)

    # Block shape: either the full row extent (small inputs) or a large tile that
    # satisfies the (8,128)/dtype sublane-packing constraints (2048 is a multiple
    # of 8/16/32, so f32/bf16/int8 inputs are all fine).
    block_rows = rows if rows <= _MAX_BLOCK_ROWS else _MAX_BLOCK_ROWS
    total_blocks = pl.cdiv(rows, block_rows)
    chunks_per_part = pl.cdiv(total_blocks, _NUM_PARTS)

    def in_map(c, i):
        logical = c * chunks_per_part + i
        # Clamp so the DMA never targets a fully out-of-bounds block; the kernel
        # masks the duplicated data by logical position, so nothing double-counts.
        return (jnp.minimum(logical, total_blocks - 1), 0)

    kernel = functools.partial(
        _soft_dice_partial_kernel,
        n_valid=n_valid,
        chunks_per_part=chunks_per_part,
        block_rows=block_rows,
    )

    partials = pl.pallas_call(
        kernel,
        out_shape=jax.ShapeDtypeStruct((_NUM_PARTS, 1, _LANES), jnp.float32),
        grid_spec=pltpu.PrefetchScalarGridSpec(
            num_scalar_prefetch=0,
            grid=(_NUM_PARTS, chunks_per_part),
            in_specs=[
                pl.BlockSpec((block_rows, _LANES), in_map),
                pl.BlockSpec((block_rows, _LANES), in_map),
            ],
            out_specs=pl.BlockSpec((1, 1, _LANES), lambda c, i: (c, 0, 0)),
            scratch_shapes=[pltpu.VMEM((block_rows, _LANES), jnp.float32)],
        ),
        compiler_params=pltpu.CompilerParams(
            # Leading axis shards across TensorCores on v7x; inner reduction axis
            # stays sequential per core.
            dimension_semantics=("parallel", "arbitrary"),
        ),
    )(pred2d, target2d)

    loss_sum = jnp.sum(partials)  # tiny (2*128) final reduce outside the kernel
    if reduction == "mean":
        return loss_sum / jnp.float32(n_valid)
    elif reduction == "sum":
        return loss_sum
    else:
        # TODO(synk): reduction='none' (elementwise output) would need a separate
        # elementwise-output kernel; only the 'mean'/'sum' reduction hot path is
        # implemented here.
        raise NotImplementedError("only 'mean' and 'sum' reductions implemented")


def _reference(pred, target):
    p = jax.nn.sigmoid(pred.astype(jnp.float32))
    t = target.astype(jnp.float32)
    loss = 1.0 - 2.0 * p * t / (p * p + t * t + _EPS)
    return jnp.mean(loss)


if __name__ == "__main__":
    key = jax.random.PRNGKey(0)
    k1, k2 = jax.random.split(key)
    # Segmentation-style shapes: NCHW logits + binary target.
    pred = jax.random.normal(k1, (2, 4, 16, 16), dtype=jnp.float32)
    target = (jax.random.uniform(k2, (2, 4, 16, 16)) > 0.5).astype(jnp.float32)

    out = soft_dice_loss(pred, target, reduction="mean")
    out = jax.block_until_ready(out)

    ref = _reference(pred, target)
    assert jnp.allclose(out, ref, atol=1e-5, rtol=1e-5), (out, ref)
    print("KERNEL_OK")
</pallas_src>

<mosaic_0001>
module attributes {stable_mosaic.version = 11 : i64} {
  func.func @_soft_dice_partial_kernel(%arg0: i32, %arg1: i32, %arg2: memref<16x128xf32, #tpu.memory_space<vmem>>, %arg3: memref<16x128xf32, #tpu.memory_space<vmem>>, %arg4: memref<1x1x128xf32, #tpu.memory_space<vmem>>, %arg5: memref<16x128xf32, #tpu.memory_space<vmem>>) attributes {dimension_semantics = [#tpu.dimension_semantics<parallel>, #tpu.dimension_semantics<arbitrary>], iteration_bounds = array<i64: 2, 1>, scalar_prefetch = 0 : i64, scratch_operands = 1 : i64, tpu.core_type = #tpu.core_type<tc>, window_params = [{transform_indices = @transform_0, window_bounds = array<i64: 16, 128>}, {transform_indices = @transform_1, window_bounds = array<i64: 16, 128>}, {transform_indices = @transform_2, window_bounds = array<i64: 1, 1, 128>}]} {
    %c0_i32 = arith.constant 0 : i32
    %0 = arith.cmpi eq, %arg1, %c0_i32 : i32
    %1 = arith.extui %0 : i1 to i32
    %c0_i32_0 = arith.constant 0 : i32
    %2 = arith.cmpi ne, %1, %c0_i32_0 : i32
    scf.if %2 {
      %cst_15 = arith.constant 0.000000e+00 : f32
      %41 = vector.broadcast %cst_15 : f32 to vector<16x128xf32>
      %c0_16 = arith.constant 0 : index
      %c0_17 = arith.constant 0 : index
      %42 = vector.load %arg5[%c0_16, %c0_17] : memref<16x128xf32, #tpu.memory_space<vmem>>, vector<16x128xf32>
      tpu.vector_store %arg5[%c0_16, %c0_17], %41 {strides = array<i32>} : memref<16x128xf32, #tpu.memory_space<vmem>>, vector<16x128xf32>,
    } else {
    }
    %c0 = arith.constant 0 : index
    %c0_1 = arith.constant 0 : index
    %3 = vector.load %arg2[%c0, %c0_1] : memref<16x128xf32, #tpu.memory_space<vmem>>, vector<16x128xf32>
    %4 = arith.negf %3 : vector<16x128xf32>
    %5 = math.exp %4 : vector<16x128xf32>
    %cst = arith.constant 1.000000e+00 : f32
    %6 = vector.broadcast %cst : f32 to vector<16x128xf32>
    %7 = arith.addf %6, %5 : vector<16x128xf32>
    %8 = arith.divf %6, %7 : vector<16x128xf32>
    %c0_2 = arith.constant 0 : index
    %c0_3 = arith.constant 0 : index
    %9 = vector.load %arg3[%c0_2, %c0_3] : memref<16x128xf32, #tpu.memory_space<vmem>>, vector<16x128xf32>
    %cst_4 = arith.constant 2.000000e+00 : f32
    %10 = vector.broadcast %cst_4 : f32 to vector<16x128xf32>
    %11 = arith.mulf %10, %8 : vector<16x128xf32>
    %12 = arith.mulf %11, %9 : vector<16x128xf32>
    %13 = arith.mulf %8, %8 : vector<16x128xf32>
    %14 = arith.mulf %9, %9 : vector<16x128xf32>
    %15 = arith.addf %13, %14 : vector<16x128xf32>
    %cst_5 = arith.constant 1.1920929E-7 : f32
    %16 = vector.broadcast %cst_5 : f32 to vector<16x128xf32>
    %17 = arith.addf %15, %16 : vector<16x128xf32>
    %18 = arith.divf %12, %17 : vector<16x128xf32>
    %cst_6 = arith.constant 1.000000e+00 : f32
    %19 = vector.broadcast %cst_6 : f32 to vector<16x128xf32>
    %20 = arith.subf %19, %18 : vector<16x128xf32>
    %c1_i32 = arith.constant 1 : i32
    %21 = arith.muli %arg0, %c1_i32 : i32
    %22 = arith.addi %21, %arg1 : i32
    %c2048_i32 = arith.constant 2048 : i32
    %23 = arith.muli %22, %c2048_i32 : i32
    %24 = tpu.iota {dimensions = array<i32: 0>} : vector<16x128xi32>
    %25 = tpu.iota {dimensions = array<i32: 1>} : vector<16x128xi32>
    %c128_i32 = arith.constant 128 : i32
    %26 = vector.broadcast %c128_i32 : i32 to vector<16x128xi32>
    %27 = arith.muli %24, %26 : vector<16x128xi32>
    %28 = vector.broadcast %23 : i32 to vector<16x128xi32>
    %29 = arith.addi %28, %27 : vector<16x128xi32>
    %30 = arith.addi %29, %25 : vector<16x128xi32>
    %c2048_i32_7 = arith.constant 2048 : i32
    %31 = vector.broadcast %c2048_i32_7 : i32 to vector<16x128xi32>
    %32 = arith.cmpi slt, %30, %31 : vector<16x128xi32>
    %c0_8 = arith.constant 0 : index
    %c0_9 = arith.constant 0 : index
    %33 = vector.load %arg5[%c0_8, %c0_9] : memref<16x128xf32, #tpu.memory_space<vmem>>, vector<16x128xf32>
    %cst_10 = arith.constant 0.000000e+00 : f32
    %34 = vector.broadcast %cst_10 : f32 to vector<16x128xf32>
    %35 = arith.select %32, %20, %34 : vector<16x128xi1>, vector<16x128xf32>
    %36 = arith.addf %33, %35 : vector<16x128xf32>
    %c0_11 = arith.constant 0 : index
    %c0_12 = arith.constant 0 : index
    %37 = vector.load %arg5[%c0_11, %c0_12] : memref<16x128xf32, #tpu.memory_space<vmem>>, vector<16x128xf32>
    tpu.vector_store %arg5[%c0_11, %c0_12], %36 {strides = array<i32>} : memref<16x128xf32, #tpu.memory_space<vmem>>, vector<16x128xf32>,
    %c0_i32_13 = arith.constant 0 : i32
    %38 = arith.cmpi eq, %arg1, %c0_i32_13 : i32
    %39 = arith.extui %38 : i1 to i32
    %c0_i32_14 = arith.constant 0 : i32
    %40 = arith.cmpi ne, %39, %c0_i32_14 : i32
    scf.if %40 {
      %c0_15 = arith.constant 0 : index
      %c0_16 = arith.constant 0 : index
      %41 = vector.load %arg5[%c0_15, %c0_16] : memref<16x128xf32, #tpu.memory_space<vmem>>, vector<16x128xf32>
      %cst_17 = arith.constant dense<0.000000e+00> : vector<128xf32>
      %42 = vector.multi_reduction <add>, %41, %cst_17 [0] : vector<16x128xf32> to vector<128xf32>
      %43 = vector.shape_cast %42 : vector<128xf32> to vector<1x1x128xf32>
      %c0_18 = arith.constant 0 : index
      %c0_19 = arith.constant 0 : index
      %c0_20 = arith.constant 0 : index
      %44 = vector.load %arg4[%c0_18, %c0_19, %c0_20] : memref<1x1x128xf32, #tpu.memory_space<vmem>>, vector<1x1x128xf32>
      tpu.vector_store %arg4[%c0_18, %c0_19, %c0_20], %43 {strides = array<i32>} : memref<1x1x128xf32, #tpu.memory_space<vmem>>, vector<1x1x128xf32>,
    } else {
    }
    return
  }
  func.func @transform_0(%arg0: i32, %arg1: i32) -> (i32, i32) {
    %c1_i32 = arith.constant 1 : i32
    %0 = arith.muli %arg0, %c1_i32 : i32
    %1 = arith.addi %0, %arg1 : i32
    %c0_i32 = arith.constant 0 : i32
    %2 = arith.minsi %1, %c0_i32 : i32
    %c0_i32_0 = arith.constant 0 : i32
    %c0_i32_1 = arith.constant 0 : i32
    return %2, %c0_i32_0 : i32, i32
  }
  func.func @transform_1(%arg0: i32, %arg1: i32) -> (i32, i32) {
    %c1_i32 = arith.constant 1 : i32
    %0 = arith.muli %arg0, %c1_i32 : i32
    %1 = arith.addi %0, %arg1 : i32
    %c0_i32 = arith.constant 0 : i32
    %2 = arith.minsi %1, %c0_i32 : i32
    %c0_i32_0 = arith.constant 0 : i32
    %c0_i32_1 = arith.constant 0 : i32
    return %2, %c0_i32_0 : i32, i32
  }
  func.func @transform_2(%arg0: i32, %arg1: i32) -> (i32, i32, i32) {
    %c0_i32 = arith.constant 0 : i32
    %c0_i32_0 = arith.constant 0 : i32
    %c0_i32_1 = arith.constant 0 : i32
    return %arg0, %c0_i32, %c0_i32_0 : i32, i32, i32
  }
}

</mosaic_0001>

<bundles_post_ra>
// kernel: soft_dice_loss.1
= control target key start
LH: loop header
LB: loop body
LE: loop exit
PB: predicated region body
PF: predicated region fallthrough
CT: control target
= control target key end

     0   :  { %s451_s9 = smov 0   ;;  %s453_s10 = smov 0   ;;  %s494_s0 = inlined_call_operand.vmem [shape: f32[16,128], index: 0, kind: input, shape index: {}]   ;;  %s495_s1 = inlined_call_operand.vmem [shape: f32[16,128], index: 1, kind: input, shape index: {}]   ;;  %s496_s2 = inlined_call_operand.vmem [shape: f32[2,1,128], index: 2, kind: output, shape index: {}]  }
   0x1   :  { %s455_s11 = smov 0  }
   0x2 LB: > { %s24_s12 = sadd.s32 1, %s430_s10  ;;  %p366_p0 = scmp.ge.s32.totalorder %s434_s11, 1  ;;  %s434_s11 = sphi %s455_s11, %s12_s11   ;;  %s430_s10 = sphi %s453_s10, %s498_s10   ;;  %s426_s9 = sphi %s451_s9, %s497_s9  }
   0x3   : > { %p26_p1 = scmp.ge.s32.totalorder %s24_s12, 2  ;;  %p160_p2 = scmp.lt.s32.totalorder %s434_s11, 3 }
   0x5   : > { %s500_s12 = smov (%p26_p1, %s24_s12), 0  ;;  %p161_p3 = pnand %p366_p0, %p160_p2 }
   0x6   : > { %p192_p4 = scmp.lt.s32.totalorder (!%p161_p3), %s426_s9, 0  ;;  %v260_v9 = vlaneseq (!%p161_p3)  ;;  %s373_s22 = sshll.u32 (!%p161_p3), %s426_s9, 11 }
   0x7   : > { %164 = sbr.rel (%p161_p3) target bundleno = 87 (0x57), region = 28  ;;  %v267_v25 = vstv (!%p161_p3), %s373_s22  ;;  %p215_p6 = scmp.lt.s32.totalorder (!%p161_p3), %s426_s9, 1 }
   0x8   : > { %v261_v14 = vshrl.u32 (!%p161_p3), %v260_v9, 7  ;;  %v264_v28 = vand.u32 (!%p161_p3), 127, %v260_v9 }
   0xa   : > { %v262_v20 = vadd.s32 (!%p161_p3), 8, %v261_v14  ;;  %v265_v23 = vmul.u32 (!%p161_p3), 128, %v261_v14 }
   0xc   : > { %v266_v24 = vmul.u32 (!%p161_p3), 128, %v262_v20  ;;  %v268_v29 = vadd.s32 (!%p161_p3), %v267_v25, %v265_v23 }
   0xe   : > { %s193_s13 = scalar_select %p192_p4, %s426_s9, 0  ;;  %v269_v30 = vadd.s32 %v267_v25, %v266_v24  ;;  %v270_v33 = vadd.s32 %v268_v29, %v264_v28 }
   0xf   : > { %s504_s9 = smov (!%p215_p6, %s426_s9), 1 }
  0x10   : > { %s367_s14 = sshll.u32 %s193_s13, 1  ;;  %v271_v34 = vadd.s32 %v269_v30, %v264_v28  ;;  %vm272_vm0 = vcmp.lt.s32.totalorder %v270_v33, 2048  ;;  %s217_s25 = scalar_lea.vmem %s496_s2, %s504_s9 }
  0x11   : > { %p195_p5 = scmp.lt.s32.totalorder %s367_s14, 1 }
  0x12   : > { %vm273_vm1 = vcmp.lt.s32.totalorder %v271_v34, 2048 }
  0x13   : > { %s502_s14 = smov (!%p195_p5, %s367_s14), 1 }
  0x14   : > { %s368_s15 = sshll.u32 %s502_s14, 3 }
  0x15   : > { %s198_s18 = scalar_lea.vmem %s494_s0, %s368_s15  ;;  %s210_s21 = scalar_lea.vmem %s495_s1, %s368_s15 }
  0x16   : > { %v224_v0 = vld [vmem:[%s198_s18] sm:$0xff]  ;;  %v225_v1 = vld [vmem:[%s198_s18 + $0x8] sm:$0xff] }
  0x17   : > { %v371_v2 = vmul.f32 -1.442695, %v224_v0  ;;  %v372_v3 = vmul.f32 -1.442695, %v225_v1  ;;  %v238_v8 = vld [vmem:[%s210_s21] sm:$0xff]  ;;  %v239_v10 = vld [vmem:[%s210_s21 + $0x8] sm:$0xff] }
  0x18   : > { %v246_v11 = vmul.f32 %v238_v8, %v238_v8  ;;  %v247_v13 = vmul.f32 %v239_v10, %v239_v10 }
  0x19   : > { %400 = vpow2.f32 %v371_v2 }
  0x1a   : > { %402 = vpow2.f32 %v372_v3 }
  0x23   : > { %v401_v4 = vpop.eup %400 }
  0x24   : > { %v403_v5 = vpop.eup %402  ;;  %v232_v6 = vadd.f32 1.0, %v401_v4 }
  0x25   : > { %v233_v7 = vadd.f32 1.0, %v403_v5 }
  0x26   : > { %404 = vrcp.f32 %v232_v6 }
  0x27   : > { %406 = vrcp.f32 %v233_v7 }
  0x30   : > { %v405_v12 = vpop.eup %404 }
  0x31   : > { %v407_v15 = vpop.eup %406  ;;  %v244_v16 = vmul.f32 %v405_v12, %v405_v12  ;;  %v240_v26 = vmul.f32 2.0, %v405_v12 }
  0x32   : > { %v245_v17 = vmul.f32 %v407_v15, %v407_v15  ;;  %v241_v27 = vmul.f32 2.0, %v407_v15 }
  0x33   : > { %v248_v18 = vadd.f32 %v246_v11, %v244_v16  ;;  %v242_v31 = vmul.f32 %v240_v26, %v238_v8 }
  0x34   : > { %v249_v19 = vadd.f32 %v247_v13, %v245_v17  ;;  %v243_v32 = vmul.f32 %v241_v27, %v239_v10 }
  0x35   : > { %v250_v21 = vadd.f32 1.1920929e-07, %v248_v18 }
  0x36   : > { %v251_v22 = vadd.f32 1.1920929e-07, %v249_v19 }
  0x37   : > { %408 = vrcp.f32 %v250_v21 }
  0x38   : > { %410 = vrcp.f32 %v251_v22 }
  0x41   : > { %v409_v35 = vpop.eup %408 }
  0x42   : > { %v411_v36 = vpop.eup %410  ;;  %v253_v37 = vmul.f32 %v409_v35, %v242_v31 }
  0x43   : > { %v255_v38 = vmul.f32 %v411_v36, %v243_v32 }
  0x44   : > { %v256_v39 = vsub.f32 1.0, %v253_v37 }
  0x45   : > { %v257_v40 = vsub.f32 1.0, %v255_v38 }
  0x46   : > { %v276_v41 = vsel %vm272_vm0, %v256_v39, 0.0 }
  0x47   : > { %v277_v42 = vsel %vm273_vm1, %v257_v40, 0.0 }
  0x48   : > { %v287_v43 = vadd.f32 %v277_v42, %v276_v41 }
  0x4a   : > { %v288_v44 = vrot.slane %v287_v43, 4 }
  0x4c   : > { %v289_v45 = vadd.f32 %v288_v44, %v287_v43 }
  0x4e   : > { %v290_v46 = vrot.slane %v289_v45, 2 }
  0x50   : > { %v291_v47 = vadd.f32 %v290_v46, %v289_v45 }
  0x52   : > { %v292_v48 = vrot.slane %v291_v47, 1 }
  0x54   : > { %v293_v49 = vadd.f32 %v292_v48, %v291_v47 }
  0x56   : > { %294 = vst [vmem:[%s217_s25] sm:$0x1] %v293_v49 }
  0x57 PF: > { %s12_s11 = sadd.s32 1, %s434_s11   ;;  %s497_s9 = smov %s430_s10 }
  0x58   : > { %p9_p7 = scmp.ge.s32.totalorder %s12_s11, 4   ;;  %s498_s10 = smov %s500_s12 }
  0x5a   :  { %11 = sbr.rel (!%p9_p7) target bundleno = 2 (0x2), region = 69 }

</bundles_post_ra>
